<compile_context>
chip_gen: v6e
topology: v6e:2x2x1
jax: 0.10.0
libtpu: 0.0.40
codegen_flags: <defaults>
</compile_context>

<pallas_src>
import functools

import numpy as np
import jax
import jax.numpy as jnp
from jax.experimental import pallas as pl
from jax.experimental.pallas import tpu as pltpu

PAD = 0  # const.PAD


def _round_up(x, m):
    return (x + m - 1) // m * m


@functools.lru_cache(maxsize=1)
def _vmem_limit():
    """v5e/v6e have 128 MiB physical VMEM -> raise the scoped limit.
    v7x has only 64 MiB physical -> keep the conservative 32 MiB default."""
    try:
        kind = jax.devices()[0].device_kind.lower()
    except Exception:  # pragma: no cover - defensive
        kind = ""
    if "v5" in kind or "v6" in kind:
        return 64 * 1024 * 1024
    return 32 * 1024 * 1024


# ----------------------------------------------------------------------------
# Matmul kernels (MXU, f32 VMEM accumulator, fused epilogues)
# ----------------------------------------------------------------------------
def _matmul_kernel(x_ref, w_ref, o_ref, acc_ref, *, relu):
    """Tiled matmul, no bias (avoids streaming an all-zeros bias)."""
    k = pl.program_id(2)

    @pl.when(k == 0)
    def _():
        acc_ref[...] = jnp.zeros_like(acc_ref)

    acc_ref[...] += jnp.dot(x_ref[...], w_ref[...],
                            preferred_element_type=jnp.float32)

    @pl.when(k == pl.num_programs(2) - 1)
    def _():
        y = acc_ref[...]
        if relu:
            y = jnp.maximum(y, 0.0)
        o_ref[...] = y.astype(o_ref.dtype)


def _matmul_bias_kernel(x_ref, w_ref, b_ref, o_ref, acc_ref, *, relu):
    """Tiled matmul with bias (+ optional ReLU) epilogue."""
    k = pl.program_id(2)

    @pl.when(k == 0)
    def _():
        acc_ref[...] = jnp.zeros_like(acc_ref)

    acc_ref[...] += jnp.dot(x_ref[...], w_ref[...],
                            preferred_element_type=jnp.float32)

    @pl.when(k == pl.num_programs(2) - 1)
    def _():
        y = acc_ref[...] + b_ref[...].astype(jnp.float32)
        if relu:
            y = jnp.maximum(y, 0.0)
        o_ref[...] = y.astype(o_ref.dtype)


def _matmul_res_ln_kernel(x_ref, w_ref, b_ref, res_ref, g_ref, bb_ref,
                          o_ref, acc_ref, *, eps):
    """Tiled matmul fused with bias + residual add + custom LayerNorm epilogue.

    Requires the whole feature (N) dimension in one block (bn == N == d_model).
    LayerNorm matches the quirky PyTorch reference: unbiased variance (n-1)
    and eps added to the std, not the variance.
    """
    k = pl.program_id(2)

    @pl.when(k == 0)
    def _():
        acc_ref[...] = jnp.zeros_like(acc_ref)

    acc_ref[...] += jnp.dot(x_ref[...], w_ref[...],
                            preferred_element_type=jnp.float32)

    @pl.when(k == pl.num_programs(2) - 1)
    def _():
        y = acc_ref[...] + b_ref[...].astype(jnp.float32)
        y = y + res_ref[...].astype(jnp.float32)
        n = y.shape[-1]
        mu = jnp.mean(y, axis=-1, keepdims=True)
        var = jnp.sum((y - mu) ** 2, axis=-1, keepdims=True) / (n - 1)
        ln = (y - mu) / (jnp.sqrt(var) + eps)
        out = g_ref[...].astype(jnp.float32) * ln + bb_ref[...].astype(jnp.float32)
        o_ref[...] = out.astype(o_ref.dtype)


def linear(x, w, b=None, *, relu=False, residual=None, ln_g=None, ln_b=None,
           ln_eps=1e-3, out_dtype=jnp.bfloat16, tm=256, tn=256, tk=512):
    """y = x @ w (+ b) [+ ReLU] [+ residual, LayerNorm] with M/N/K tiling.

    x: [M, K], w: [K, N]; bf16 operand tiles, f32 accumulation on the MXU.
    Weights/biases are stored bf16/f32 at init so the astype below is a no-op.
    """
    M, K = x.shape
    Kw, N = w.shape
    assert K == Kw
    fuse_ln = ln_g is not None
    has_bias = b is not None or fuse_ln

    # Tile selection: full dim when it fits, otherwise a 128-aligned tile.
    # (Small-M decode regime: K <= tk => whole K in one step, no K loop.)
    bm = M if M <= tm else tm
    bk = K if K <= tk else tk
    bn = N if (N <= tn or fuse_ln) else tn

    if fuse_ln and N >= 2048:
        # Fused-LN forces bn == N; shrink bm/bk so the per-step working set
        # stays inside v7x's 32 MiB scoped VMEM limit at large d_model.
        bm = min(bm, 128)
        bk = min(bk, 256)

    Mp, Kp, Np = _round_up(M, bm), _round_up(K, bk), _round_up(N, bn)

    xw = x.astype(jnp.bfloat16)
    ww = w.astype(jnp.bfloat16)  # no-op: weights pre-cast at init
    if (Mp, Kp) != (M, K):
        xw = jnp.pad(xw, ((0, Mp - M), (0, Kp - K)))
    if (Kp, Np) != (K, N):
        # TODO(synk): pre-pad weights once at init if this cold path ever
        # triggers (it does not for standard d_model/d_inner/vocab sizes).
        ww = jnp.pad(ww, ((0, Kp - K), (0, Np - N)))

    gm, gn, gk = Mp // bm, Np // bn, Kp // bk

    in_specs = [pl.BlockSpec((bm, bk), lambda i, j, k: (i, k)),
                pl.BlockSpec((bk, bn), lambda i, j, k: (k, j))]
    args = [xw, ww]

    if has_bias:
        if b is None:
            b = jnp.zeros((N,), jnp.float32)
        bb = b.astype(jnp.float32).reshape(1, N)
        if Np != N:
            bb = jnp.pad(bb, ((0, 0), (0, Np - N)))
        in_specs.append(pl.BlockSpec((1, bn), lambda i, j, k: (0, j)))
        args.append(bb)

    if fuse_ln:
        assert Np == N, "LayerNorm fusion needs the whole feature dim per block"
        res = residual.astype(jnp.bfloat16)
        if Mp != M:
            res = jnp.pad(res, ((0, Mp - M), (0, 0)))
        in_specs += [pl.BlockSpec((bm, bn), lambda i, j, k: (i, j)),
                     pl.BlockSpec((1, bn), lambda i, j, k: (0, j)),
                     pl.BlockSpec((1, bn), lambda i, j, k: (0, j))]
        args += [res, ln_g.astype(jnp.float32).reshape(1, N),
                 ln_b.astype(jnp.float32).reshape(1, N)]
        kernel = functools.partial(_matmul_res_ln_kernel, eps=ln_eps)
    elif has_bias:
        kernel = functools.partial(_matmul_bias_kernel, relu=relu)
    else:
        kernel = functools.partial(_matmul_kernel, relu=relu)

    out = pl.pallas_call(
        kernel,
        out_shape=jax.ShapeDtypeStruct((Mp, Np), out_dtype),
        grid=(gm, gn, gk),
        in_specs=in_specs,
        out_specs=pl.BlockSpec((bm, bn), lambda i, j, k: (i, j)),
        scratch_shapes=[pltpu.VMEM((bm, bn), jnp.float32)],
        compiler_params=pltpu.CompilerParams(
            dimension_semantics=("parallel", "parallel", "arbitrary"),
            vmem_limit_bytes=_vmem_limit()),
    )(*args)

    if (Mp, Np) != (M, N):
        out = out[:M, :N]
    return out


# ----------------------------------------------------------------------------
# Flash-style attention kernel (head-major [B, L, H*d] layout, Lk tiling)
# ----------------------------------------------------------------------------
def _flash_attn_kernel(q_ref, k_ref, v_ref, kpad_ref, o_ref,
                       m_sc, l_sc, acc_sc, *, n_head, d_k, d_v, causal):
    """One batch element, one Lk tile per grid step; all heads in-kernel.

    Inputs/outputs stay in head-major feature layout [1, L, H*d] so no HBM
    transposes are needed; the per-head split is a cheap VMEM lane slice.
    1/temper is already folded into the Q projection weights.
    """
    kv = pl.program_id(1)
    Lq = q_ref.shape[1]
    tk = k_ref.shape[1]

    @pl.when(kv == 0)
    def _():
        m_sc[...] = jnp.full(m_sc.shape, -jnp.inf, jnp.float32)
        l_sc[...] = jnp.zeros(l_sc.shape, jnp.float32)
        acc_sc[...] = jnp.zeros(acc_sc.shape, jnp.float32)

    neg = jnp.float32(-1e30)  # finite: fully-masked PAD-query rows stay NaN-free
    pad = kpad_ref[0] > 0                                       # (1, tk)
    if causal:
        q_idx = jax.lax.broadcasted_iota(jnp.int32, (Lq, tk), 0)
        k_idx = jax.lax.broadcasted_iota(jnp.int32, (Lq, tk), 1) + kv * tk
        mask = jnp.logical_or(pad, k_idx > q_idx)               # (Lq, tk)
    else:
        mask = pad                                              # (1, tk)

    # Static unroll over heads (n_head is small); 2-D MXU matmuls per head.
    for h in range(n_head):
        qh = q_ref[0, :, h * d_k:(h + 1) * d_k]                 # (Lq, dk) bf16
        kh = k_ref[0, :, h * d_k:(h + 1) * d_k]                 # (tk, dk) bf16
        vh = v_ref[0, :, h * d_v:(h + 1) * d_v]                 # (tk, dv) bf16
        # q @ k^T (contract the head-feature dim of both operands).
        s = jax.lax.dot_general(qh, kh, (((1,), (1,)), ((), ())),
                                preferred_element_type=jnp.float32)  # (Lq, tk)
        s = jnp.where(mask, neg, s)

        m_prev = m_sc[h]                                        # (Lq, 1)
        m_new = jnp.maximum(m_prev, jnp.max(s, axis=-1, keepdims=True))
        alpha = jnp.exp(m_prev - m_new)
        p = jnp.exp(s - m_new)
        l_sc[h] = alpha * l_sc[h] + jnp.sum(p, axis=-1, keepdims=True)
        acc_sc[h] = alpha * acc_sc[h] + jnp.dot(
            p.astype(vh.dtype), vh, preferred_element_type=jnp.float32)
        m_sc[h] = m_new

    @pl.when(kv == pl.num_programs(1) - 1)
    def _():
        # Write a lane-dense (1, Lq, H*dv) slab; per-head VMEM slices, one
        # dense HBM writeback of the whole block.
        for h in range(n_head):
            out_h = acc_sc[h] * pl.reciprocal(l_sc[h], approx=True)
            o_ref[0, :, h * d_v:(h + 1) * d_v] = out_h.astype(o_ref.dtype)


def flash_attention(q, k, v, key_pad, *, n_head, d_k, d_v, causal,
                    max_tk=512):
    """q: [B, Lq, H*dk], k: [B, Lk, H*dk], v: [B, Lk, H*dv] (head-major cols).
    key_pad: [B, Lk] int32, 1 where the key token is PAD.
    Returns [B, Lq, H*dv] bf16 in the same head-major column layout."""
    B, Lq, hdk = q.shape
    Lk = k.shape[1]
    hdv = v.shape[2]

    if Lk <= max_tk:
        tk, Lkp = Lk, Lk
    else:
        tk = max_tk
        Lkp = _round_up(Lk, tk)
        k = jnp.pad(k, ((0, 0), (0, Lkp - Lk), (0, 0)))
        v = jnp.pad(v, ((0, 0), (0, Lkp - Lk), (0, 0)))
        key_pad = jnp.pad(key_pad, ((0, 0), (0, Lkp - Lk)), constant_values=1)
    n_kv = Lkp // tk
    kpad3 = key_pad.reshape(B, 1, Lkp).astype(jnp.int32)

    # TODO(synk): for very long Lq, also tile the query axis (extra parallel
    # grid dim) to bound the per-step (Lq, tk) score tensor.
    kernel = functools.partial(_flash_attn_kernel, n_head=n_head, d_k=d_k,
                               d_v=d_v, causal=causal)
    return pl.pallas_call(
        kernel,
        out_shape=jax.ShapeDtypeStruct((B, Lq, hdv), jnp.bfloat16),
        grid=(B, n_kv),
        in_specs=[
            pl.BlockSpec((1, Lq, hdk), lambda b, s: (b, 0, 0)),   # Q resident
            pl.BlockSpec((1, tk, hdk), lambda b, s: (b, s, 0)),   # K stream
            pl.BlockSpec((1, tk, hdv), lambda b, s: (b, s, 0)),   # V stream
            pl.BlockSpec((1, 1, tk), lambda b, s: (b, 0, s)),     # key-pad row
        ],
        out_specs=pl.BlockSpec((1, Lq, hdv), lambda b, s: (b, 0, 0)),
        scratch_shapes=[
            pltpu.VMEM((n_head, Lq, 1), jnp.float32),   # running max m
            pltpu.VMEM((n_head, Lq, 1), jnp.float32),   # running sum l
            pltpu.VMEM((n_head, Lq, d_v), jnp.float32), # output accumulator
        ],
        compiler_params=pltpu.CompilerParams(
            dimension_semantics=("parallel", "arbitrary"),
            vmem_limit_bytes=_vmem_limit()),
    )(q.astype(jnp.bfloat16), k.astype(jnp.bfloat16), v.astype(jnp.bfloat16),
      kpad3)


# ----------------------------------------------------------------------------
# Model pieces (glue in plain JAX, hot paths in Pallas kernels above)
# ----------------------------------------------------------------------------
def position_encoding_init(n_position, d_pos_vec):
    pe = np.array(
        [[pos / np.power(10000, 2 * (j // 2) / d_pos_vec) for j in range(d_pos_vec)]
         if pos != 0 else np.zeros(d_pos_vec)
         for pos in range(n_position)])
    pe[1:, 0::2] = np.sin(pe[1:, 0::2])
    pe[1:, 1::2] = np.cos(pe[1:, 1::2])
    return jnp.asarray(pe, jnp.float32)


def multi_head_attention(q_in, kv_in, key_pad, p, cfg, *, self_attn, causal):
    """Matches the reference MultiHeadAttention: per-head projections
    (head-major feature concat), attention (temper = sqrt(d_model), folded
    into W_q), output proj, residual, custom layer-norm.  Dropout = identity."""
    n_head, d_k, d_v, d_model = cfg["n_head"], cfg["d_k"], cfg["d_v"], cfg["d_model"]
    B, Lq, _ = q_in.shape
    Lk = kv_in.shape[1]
    h_dk = n_head * d_k
    h_dv = n_head * d_v

    q_flat = q_in.reshape(B * Lq, d_model)
    residual = q_flat

    if self_attn:
        qkv = linear(q_flat, p["w_qkv"])                        # [B*Lq, 2Hdk+Hdv]
        q3 = qkv[:, :h_dk].reshape(B, Lq, h_dk)
        k3 = qkv[:, h_dk:2 * h_dk].reshape(B, Lq, h_dk)
        v3 = qkv[:, 2 * h_dk:].reshape(B, Lq, h_dv)
    else:
        q3 = linear(q_flat, p["w_q"]).reshape(B, Lq, h_dk)
        kvp = linear(kv_in.reshape(B * Lk, d_model), p["w_kv"])  # [B*Lk, Hdk+Hdv]
        k3 = kvp[:, :h_dk].reshape(B, Lk, h_dk)
        v3 = kvp[:, h_dk:].reshape(B, Lk, h_dv)

    # Attention consumes/produces head-major [B, L, H*d] directly:
    # no XLA-level (0,2,1,3) transposes and no [B,Lq,Lk] mask tensor.
    ctx = flash_attention(q3, k3, v3, key_pad, n_head=n_head, d_k=d_k,
                          d_v=d_v, causal=causal)
    ctx = ctx.reshape(B * Lq, h_dv)

    # Output projection with fused bias + residual + LayerNorm epilogue.
    out = linear(ctx, p["proj_w"], p["proj_b"],
                 residual=residual, ln_g=p["ln_g"], ln_b=p["ln_b"])
    return out.reshape(B, Lq, d_model)


def positionwise_ffn(x, p):
    """Conv1d(k=1) -> relu -> Conv1d(k=1) -> residual -> layer-norm (fused)."""
    B, L, D = x.shape
    xt = x.reshape(B * L, D)
    h = linear(xt, p["w1"], p["b1"], relu=True)
    o = linear(h, p["w2"], p["b2"],
               residual=xt, ln_g=p["ln_g"], ln_b=p["ln_b"])
    return o.reshape(B, L, D)


def transformer_forward(params, cfg, src_seq, src_pos, tgt_seq, tgt_pos):
    # Transformer.forward: drop last tgt token/position
    tgt_seq = tgt_seq[:, :-1]
    tgt_pos = tgt_pos[:, :-1]

    # Key-pad vectors ([B, L] ints) replace the old [B, Lq, Lk] mask tensors;
    # the causal part of the decoder self-attn mask is built in-kernel.
    src_pad = (src_seq == PAD).astype(jnp.int32)
    tgt_pad = (tgt_seq == PAD).astype(jnp.int32)

    # ----- Encoder -----
    # TODO(synk): embedding-table gathers stay in XLA (no clean BlockSpec form).
    enc_input = (jnp.take(params["src_emb"], src_seq, axis=0)
                 + jnp.take(params["pos_enc"], src_pos, axis=0))
    enc_out = enc_input.astype(jnp.bfloat16)
    enc_outputs = []
    for lp in params["enc_layers"]:
        enc_out = multi_head_attention(enc_out, enc_out, src_pad, lp["slf"],
                                       cfg, self_attn=True, causal=False)
        enc_out = positionwise_ffn(enc_out, lp["ffn"])
        enc_outputs.append(enc_out)

    # ----- Decoder -----
    dec_input = (jnp.take(params["tgt_emb"], tgt_seq, axis=0)
                 + jnp.take(params["pos_enc"], tgt_pos, axis=0))
    dec_out = dec_input.astype(jnp.bfloat16)
    # NB: reference zips decoder layer i with encoder layer i's output.
    for lp, enc_o in zip(params["dec_layers"], enc_outputs):
        dec_out = multi_head_attention(dec_out, dec_out, tgt_pad, lp["slf"],
                                       cfg, self_attn=True, causal=True)
        dec_out = multi_head_attention(dec_out, enc_o, src_pad, lp["enc"],
                                       cfg, self_attn=False, causal=False)
        dec_out = positionwise_ffn(dec_out, lp["ffn"])

    # Final projection shares the tgt embedding weight (proj_share_weight=True);
    # the transposed bf16 weight is materialized once at init.  Logits kept
    # f32 for parity with the reference (bf16 is an option if downstream
    # loss/argmax allows halving the largest store).
    B, Lt, D = dec_out.shape
    logits = linear(dec_out.reshape(B * Lt, D), params["tgt_proj_w"],
                    out_dtype=jnp.float32)
    return logits  # [(B*Lt), n_tgt_vocab] == seq_logit.view(-1, vocab)


# ----------------------------------------------------------------------------
# Deterministic parameter init (synthetic; shapes follow the module __init__)
# ----------------------------------------------------------------------------
def init_params(key, *, n_src_vocab, n_tgt_vocab, n_position, n_layers,
                n_head, d_model, d_inner):
    d_k = d_v = d_model // n_head
    keys = iter(jax.random.split(key, 256))
    temper = float(np.sqrt(d_model))  # reference temper = sqrt(d_model)

    def nrm(shape, scale=0.1):
        return scale * jax.random.normal(next(keys), shape, jnp.float32)

    def mha_params(self_attn):
        # 1/temper folded into the Q projection weights (zero runtime cost).
        w_qs = nrm((d_model, n_head * d_k)) * (1.0 / temper)
        w_ks = nrm((d_model, n_head * d_k))
        w_vs = nrm((d_model, n_head * d_v))
        d = dict(
            proj_w=nrm((n_head * d_v, d_model)).astype(jnp.bfloat16),
            proj_b=jnp.zeros((d_model,), jnp.float32),
            ln_g=jnp.ones((d_model,), jnp.float32),
            ln_b=jnp.zeros((d_model,), jnp.float32),
        )
        if self_attn:
            d["w_qkv"] = jnp.concatenate([w_qs, w_ks, w_vs], 1).astype(jnp.bfloat16)
        else:
            d["w_q"] = w_qs.astype(jnp.bfloat16)
            d["w_kv"] = jnp.concatenate([w_ks, w_vs], 1).astype(jnp.bfloat16)
        return d

    def ffn_params():
        return dict(
            w1=nrm((d_model, d_inner)).astype(jnp.bfloat16),
            b1=jnp.zeros((d_inner,), jnp.float32),
            w2=nrm((d_inner, d_model)).astype(jnp.bfloat16),
            b2=jnp.zeros((d_model,), jnp.float32),
            ln_g=jnp.ones((d_model,), jnp.float32),
            ln_b=jnp.zeros((d_model,), jnp.float32),
        )

    src_emb = nrm((n_src_vocab, d_model), 1.0).at[PAD].set(0.0)  # padding_idx=0
    tgt_emb = nrm((n_tgt_vocab, d_model), 1.0).at[PAD].set(0.0)  # shared with proj
    pos_enc = position_encoding_init(n_position, d_model)

    params = dict(
        src_emb=src_emb,
        tgt_emb=tgt_emb,
        tgt_proj_w=tgt_emb.T.astype(jnp.bfloat16),  # tied weight, pre-transposed
        pos_enc=pos_enc,
        enc_layers=[dict(slf=mha_params(True), ffn=ffn_params())
                    for _ in range(n_layers)],
        dec_layers=[dict(slf=mha_params(True), enc=mha_params(False),
                         ffn=ffn_params())
                    for _ in range(n_layers)],
    )
    cfg = dict(n_head=n_head, d_k=d_k, d_v=d_v, d_model=d_model)
    return params, cfg


# ----------------------------------------------------------------------------
if __name__ == "__main__":
    # Small config consistent with the module (d_model == emb_dim).
    n_src_vocab = 11
    n_tgt_vocab = 11
    n_max_seq = 12
    n_layers = 2
    n_head = 4
    d_model = 32
    d_inner = 64
    B = 2
    L_src = 8
    L_tgt = 9  # sliced to 8 inside forward

    key = jax.random.PRNGKey(0)
    k_par, k_src, k_tgt = jax.random.split(key, 3)

    params, cfg = init_params(
        k_par, n_src_vocab=n_src_vocab, n_tgt_vocab=n_tgt_vocab,
        n_position=n_max_seq + 1, n_layers=n_layers, n_head=n_head,
        d_model=d_model, d_inner=d_inner)

    # Token ids in [1, vocab); pad the tails (index 0 == PAD); positions are
    # 1-based with 0 at PAD slots (standard data pipeline for this model).
    src_seq = jax.random.randint(k_src, (B, L_src), 1, n_src_vocab, jnp.int32)
    src_seq = src_seq.at[:, -2:].set(PAD)
    src_pos = jnp.where(src_seq != PAD,
                        jnp.broadcast_to(jnp.arange(1, L_src + 1), (B, L_src)), 0)

    tgt_seq = jax.random.randint(k_tgt, (B, L_tgt), 1, n_tgt_vocab, jnp.int32)
    tgt_seq = tgt_seq.at[:, -2:].set(PAD)
    tgt_pos = jnp.where(tgt_seq != PAD,
                        jnp.broadcast_to(jnp.arange(1, L_tgt + 1), (B, L_tgt)), 0)

    # TODO(synk): dropout layers are treated as identity (inference mode).
    logits = transformer_forward(params, cfg, src_seq, src_pos, tgt_seq, tgt_pos)
    logits = jax.block_until_ready(logits)

    expected_shape = (B * (L_tgt - 1), n_tgt_vocab)
    assert logits.shape == expected_shape, logits.shape
    assert bool(jnp.all(jnp.isfinite(logits)))
    print("KERNEL_OK")
</pallas_src>

<mosaic_0001>
module attributes {stable_mosaic.version = 11 : i64} {
  func.func @_matmul_kernel(%arg0: i32, %arg1: i32, %arg2: i32, %arg3: memref<16x32xbf16, #tpu.memory_space<vmem>>, %arg4: memref<32x96xbf16, #tpu.memory_space<vmem>>, %arg5: memref<16x96xbf16, #tpu.memory_space<vmem>>, %arg6: memref<16x96xf32, #tpu.memory_space<vmem>>) attributes {dimension_semantics = [#tpu.dimension_semantics<parallel>, #tpu.dimension_semantics<parallel>, #tpu.dimension_semantics<arbitrary>], iteration_bounds = array<i64: 1, 1, 1>, scalar_prefetch = 0 : i64, scratch_operands = 1 : i64, tpu.core_type = #tpu.core_type<tc>, window_params = [{transform_indices = @transform_0, window_bounds = array<i64: 16, 32>}, {transform_indices = @transform_1, window_bounds = array<i64: 32, 96>}, {transform_indices = @transform_2, window_bounds = array<i64: 16, 96>}]} {
    %c0_i32 = arith.constant 0 : i32
    %0 = arith.cmpi eq, %arg2, %c0_i32 : i32
    %1 = arith.extui %0 : i1 to i32
    %c0_i32_0 = arith.constant 0 : i32
    %2 = arith.cmpi ne, %1, %c0_i32_0 : i32
    scf.if %2 {
      %cst_10 = arith.constant 0.000000e+00 : f32
      %12 = vector.broadcast %cst_10 : f32 to vector<16x96xf32>
      %c0_11 = arith.constant 0 : index
      %c0_12 = arith.constant 0 : index
      %13 = vector.load %arg6[%c0_11, %c0_12] : memref<16x96xf32, #tpu.memory_space<vmem>>, vector<16x96xf32>
      tpu.vector_store %arg6[%c0_11, %c0_12], %12 {strides = array<i32>} : memref<16x96xf32, #tpu.memory_space<vmem>>, vector<16x96xf32>,
    } else {
    }
    %c0 = arith.constant 0 : index
    %c0_1 = arith.constant 0 : index
    %3 = vector.load %arg6[%c0, %c0_1] : memref<16x96xf32, #tpu.memory_space<vmem>>, vector<16x96xf32>
    %c0_2 = arith.constant 0 : index
    %c0_3 = arith.constant 0 : index
    %4 = vector.load %arg3[%c0_2, %c0_3] : memref<16x32xbf16, #tpu.memory_space<vmem>>, vector<16x32xbf16>
    %c0_4 = arith.constant 0 : index
    %c0_5 = arith.constant 0 : index
    %5 = vector.load %arg4[%c0_4, %c0_5] : memref<32x96xbf16, #tpu.memory_space<vmem>>, vector<32x96xbf16>
    %cst = arith.constant dense<0.000000e+00> : vector<16x96xf32>
    %6 = tpu.matmul %4, %5, %cst {dimension_numbers = #tpu.dot_dimension_numbers<[1], [0], [0], [1], [0, 0, 1, 1], [], []>} : vector<16x32xbf16>, vector<32x96xbf16>, vector<16x96xf32> -> vector<16x96xf32>
    %7 = arith.addf %3, %6 : vector<16x96xf32>
    %c0_6 = arith.constant 0 : index
    %c0_7 = arith.constant 0 : index
    %8 = vector.load %arg6[%c0_6, %c0_7] : memref<16x96xf32, #tpu.memory_space<vmem>>, vector<16x96xf32>
    tpu.vector_store %arg6[%c0_6, %c0_7], %7 {strides = array<i32>} : memref<16x96xf32, #tpu.memory_space<vmem>>, vector<16x96xf32>,
    %c0_i32_8 = arith.constant 0 : i32
    %9 = arith.cmpi eq, %arg2, %c0_i32_8 : i32
    %10 = arith.extui %9 : i1 to i32
    %c0_i32_9 = arith.constant 0 : i32
    %11 = arith.cmpi ne, %10, %c0_i32_9 : i32
    scf.if %11 {
      %c0_10 = arith.constant 0 : index
      %c0_11 = arith.constant 0 : index
      %12 = vector.load %arg6[%c0_10, %c0_11] : memref<16x96xf32, #tpu.memory_space<vmem>>, vector<16x96xf32>
      %13 = arith.truncf %12 : vector<16x96xf32> to vector<16x96xbf16>
      %c0_12 = arith.constant 0 : index
      %c0_13 = arith.constant 0 : index
      %14 = vector.load %arg5[%c0_12, %c0_13] : memref<16x96xbf16, #tpu.memory_space<vmem>>, vector<16x96xbf16>
      tpu.vector_store %arg5[%c0_12, %c0_13], %13 {strides = array<i32>} : memref<16x96xbf16, #tpu.memory_space<vmem>>, vector<16x96xbf16>,
    } else {
    }
    return
  }
  func.func @transform_0(%arg0: i32, %arg1: i32, %arg2: i32) -> (i32, i32) {
    %c0_i32 = arith.constant 0 : i32
    return %arg0, %arg2 : i32, i32
  }
  func.func @transform_1(%arg0: i32, %arg1: i32, %arg2: i32) -> (i32, i32) {
    %c0_i32 = arith.constant 0 : i32
    return %arg2, %arg1 : i32, i32
  }
  func.func @transform_2(%arg0: i32, %arg1: i32, %arg2: i32) -> (i32, i32) {
    %c0_i32 = arith.constant 0 : i32
    return %arg0, %arg1 : i32, i32
  }
}

</mosaic_0001>

<bundles_post_ra>
// kernel: tpu_custom_call.1
= control target key start
LH: loop header
LB: loop body
LE: loop exit
PB: predicated region body
PF: predicated region fallthrough
CT: control target
= control target key end

     0   :  { %7 = vsyncpa [#allocation4], 0  ;;  %s296_s0 = inlined_call_operand.hbm [shape: bf16[16,32], index: 0, kind: input, shape index: {}]   ;;  %s297_s1 = inlined_call_operand.hbm [shape: bf16[32,96], index: 1, kind: input, shape index: {}]   ;;  %s298_s2 = inlined_call_operand.hbm [shape: bf16[16,96], index: 2, kind: output, shape index: {}]  }
   0x1   :  { %8 = vsyncpa [#allocation7], 0 }
   0x2   :  { %9 = vsyncpa [#allocation5], 0  ;;  %s252_s9 = smov [#allocation3]  }
   0x3   :  { %s15_s10 = sshll.u32 %s252_s9, 4  ;;  %s16_s10 = int_to_ptr.vmem [resolvable:$true] %s15_s10 }
   0x4   :  { %s194_s11 = scalar_lea.vmem %s16_s10, 128  ;;  %p199_p1 = scmp.lt.s32.totalorder %s16_s10, %s16_s10 }
   0x5   :  { %p195_p0 = scmp.ne.s32.totalorder %s16_s10, %s194_s11  ;;  %p200_p2 = scmp.lt.s32.totalorder %s194_s11, %s194_s11 }
   0x7   :  { %p201_p3 = por %p200_p2, %p199_p1 }
   0x9   :  { %p202_p4 = pnand %p201_p3, %p195_p0 }
   0xb   :  { %205 = shalt.err (!%p202_p4)
}
   0xc   :  { %s253_s12 = smov 64   ;;  %s254_s13 = smov 4  }
   0xd   :  { %21 = dma.hbm_to_vmem [thread:$0]  %s296_s0, 128, %s16_s10, [#allocation4], %s253_s12, %s253_s12, %s254_s13  }
   0xe   :  { %s255_s16 = smov [#allocation6]  }
   0xf   :  { %s27_s17 = sshll.u32 %s255_s16, 4  ;;  %s28_s17 = int_to_ptr.vmem [resolvable:$true] %s27_s17 }
  0x10   :  { %s214_s18 = scalar_lea.vmem %s28_s17, 256  ;;  %p219_p6 = scmp.lt.s32.totalorder %s28_s17, %s28_s17 }
  0x11   :  { %p215_p5 = scmp.ne.s32.totalorder %s28_s17, %s214_s18  ;;  %p220_p7 = scmp.lt.s32.totalorder %s214_s18, %s214_s18 }
  0x13   :  { %p221_p8 = por %p220_p7, %p219_p6 }
  0x15   :  { %p222_p9 = pnand %p221_p8, %p215_p5 }
  0x17   :  { %225 = shalt.err (!%p222_p9)
}
  0x18   :  { %33 = dma.hbm_to_vmem [thread:$0]  %s297_s1, 256, %s28_s17, [#allocation7], %s253_s12, %s253_s12, %s254_s13  }
  0x19   :  { %246 = dma.done.wait [#allocation4], 128  }
  0x1a   :  { %247 = vsyncadd [#allocation4], 4294967168 }
  0x1b   :  { %248 = dma.done.wait [#allocation7], 256  }
  0x1c   :  { %249 = vsyncadd [#allocation7], 4294967040  ;;  %vm45_vm0 = vcmask 785408   ;;  %v256_v0 = vmov 0.0   ;;  %vm257_vm1 = vmmov 0   ;;  %v183_v1 = vld [vmem:[#allocation6 + $0x8] sm:$0xff]  }
  0x1d   :  { %46 = vst.msk [vmem:[#allocation2] sm:$0xff] %vm45_vm0, %v256_v0  ;;  %47 = vst.msk [vmem:[#allocation2 + $0x8] sm:$0xff] %vm45_vm0, %v256_v0  ;;  %168 = vmatprep.subr.bf16.mxu0 %v256_v0  ;;  %172 = vmatprep.mubr.msk.bf16.mxu0 %vm257_vm1, %v256_v0  ;;  %v184_v2 = vld [vmem:[#allocation6] sm:$0xff]   ;;  %v185_v3 = vld [vmem:[#allocation3] sm:$0xff]   ;;  %vm73_vm2 = vcmask 261120   ;;  %vm136_vm3 = vcmask 781312  }
  0x1e   :  { %169 = vmatpush3.bf16.msra.mxu0 %v183_v1  ;;  %s258_s0 = smov [#allocation8]  }
  0x1f   :  { %170 = vmatprep.subr.bf16.mxu0 %v256_v0  ;;  %s144_s1 = sshll.u32 %s258_s0, 4  ;;  %s145_s1 = int_to_ptr.vmem [resolvable:$true] %s144_s1 }
  0x20   :  { %s226_s21 = scalar_lea.vmem %s145_s1, 128  ;;  %p231_p11 = scmp.lt.s32.totalorder %s145_s1, %s145_s1 }
  0x21   :  { %p227_p10 = scmp.ne.s32.totalorder %s145_s1, %s226_s21  ;;  %p232_p12 = scmp.lt.s32.totalorder %s226_s21, %s226_s21 }
  0x22   :  { %171 = vmatpush3.bf16.msra.mxu0 %v184_v2 }
  0x23   :  { %p233_p13 = por %p232_p12, %p231_p11 }
  0x24   :  { %v48_v4 = vld [vmem:[#allocation2] sm:$0xff]  ;;  %v49_v8 = vld [vmem:[#allocation2 + $0x8] sm:$0xff] }
  0x25   :  { %173 = vmatmul.mubr.msk.bf16.vlgmr.msra.gmra.mxu0 %vm73_vm2, %v185_v3  ;;  %p234_p0 = pnand %p233_p13, %p227_p10 }
  0xe5   :  { %v111_v5 = vpop.f32.mrf.mxu0 }
  0xe6   :  { %v118_v6 = vadd.f32 %v111_v5, %v48_v4 }
  0xe7   :  { %v174_v7 = vpop.f32.mrf.mxu0 }
  0xe8   :  { %121 = vst.msk [vmem:[#allocation2] sm:$0xff] %vm45_vm0, %v118_v6 }
  0xe9   :  { %v114_v9 = vpop.f32.mrf.mxu0 }
  0xea   :  { %v119_v10 = vadd.f32 %v114_v9, %v49_v8 }
  0xeb   :  { %v175_v11 = vpop.f32.mrf.mxu0 }
  0xec   :  { %122 = vst.msk [vmem:[#allocation2 + $0x8] sm:$0xff] %vm45_vm0, %v119_v10 }
  0xef   :  { %v126_v12 = vld [vmem:[#allocation2] sm:$0xff] }
  0xf0   :  { %v163_v13 = vpack.c.bf16 %v126_v12, %v126_v12 }
  0xf2   :  { %137 = vst.msk [vmem:[#allocation8] sm:$0xf] %vm136_vm3, %v163_v13 }
  0xf3   :  { %v127_v14 = vld [vmem:[#allocation2 + $0x8] sm:$0xff] }
  0xf4   :  { %v164_v15 = vpack.c.bf16 %v127_v14, %v127_v14 }
  0xf6   :  { %138 = vst.msk [vmem:[#allocation8 + $0x4] sm:$0xf] %vm136_vm3, %v164_v15 }
  0xf7   :  { %237 = shalt.err (!%p234_p0)
}
  0xf8   :  { %150 = dma.vmem_to_hbm [thread:$0]  %s145_s1, 128, %s298_s2, [#allocation5], %s253_s12, %s253_s12, %s254_s13  }
  0xf9   :  { %250 = dma.done.wait [#allocation5], 128  }
  0xfa   :  { %251 = vsyncadd [#allocation5], 4294967168 }
  0xfb   :  { %154 = vsyncpa [#allocation4], 1 }
  0xfc   :  { %155 = vsyncpa [#allocation7], 1 }
  0xfd   :  { %156 = vsyncpa [#allocation5], 1 }

</bundles_post_ra>
